<compile_context>
chip_gen: v7x
topology: tpu7x:2x2x1
jax: 0.10.0
libtpu: 0.0.40
codegen_flags: <defaults>
</compile_context>

<pallas_src>
import functools

import jax
import jax.numpy as jnp
from jax.experimental import pallas as pl
from jax.experimental.pallas import tpu as pltpu

_VMEM_LIMIT = None


def _vmem_limit_bytes():
    """Generation-aware VMEM budget (~65% of physical, capped)."""
    global _VMEM_LIMIT
    if _VMEM_LIMIT is None:
        cap = 128 * 1024 * 1024
        try:
            cap = int(getattr(pltpu.get_tpu_info(), "vmem_capacity_bytes", cap))
        except Exception:
            pass
        _VMEM_LIMIT = min(int(cap * 0.65), 100 * 1024 * 1024)
    return _VMEM_LIMIT


def _apply_act(x, activation):
    if activation == "relu":
        return jnp.maximum(x, 0.0)
    if activation == "tanh":
        return jnp.tanh(x)
    return x


# -----------------------------------------------------------------------------
# Generic matmul kernel
# -----------------------------------------------------------------------------

def _matmul_kernel(a_ref, b_ref, bias_ref, o_ref, *, activation):
    acc = jnp.dot(a_ref[...], b_ref[...], preferred_element_type=jnp.float32)
    acc = _apply_act(acc + bias_ref[...], activation)
    o_ref[...] = acc.astype(o_ref.dtype)


def pallas_matmul(a, b, bias=None, activation="none",
                  out_dtype=jnp.bfloat16, compute_dtype=jnp.bfloat16, tm=2048):
    """out = act(a @ b + bias).  a: (M, K), b: (K, N)."""
    M, K = a.shape
    K2, N = b.shape
    assert K == K2
    a = a.astype(compute_dtype)   # no-op when the producer already emitted compute_dtype
    b = b.astype(compute_dtype)
    if bias is None:
        bias = jnp.zeros((N,), jnp.float32)
    bias2 = bias.astype(jnp.float32).reshape(1, N)

    TM = min(tm, M)
    if M // TM < 2 and M >= 512 and M % 2 == 0:
        TM = M // 2   # >=2 parallel blocks so both TensorCores get work on dual-TC chips
    grid = (pl.cdiv(M, TM),)

    return pl.pallas_call(
        functools.partial(_matmul_kernel, activation=activation),
        out_shape=jax.ShapeDtypeStruct((M, N), out_dtype),
        grid=grid,
        in_specs=[pl.BlockSpec((TM, K), lambda i: (i, 0)),
                  pl.BlockSpec((K, N), lambda i: (0, 0)),
                  pl.BlockSpec((1, N), lambda i: (0, 0))],
        out_specs=pl.BlockSpec((TM, N), lambda i: (i, 0)),
        compiler_params=pltpu.CompilerParams(
            dimension_semantics=("parallel",),
            vmem_limit_bytes=_vmem_limit_bytes()),
    )(a, b, bias2)


# -----------------------------------------------------------------------------
# Direct 3x3 conv kernel (no im2col materialization in HBM)
# -----------------------------------------------------------------------------

def _conv3x3_kernel(x_ref, w_ref, b_ref, o_ref, *, activation):
    # x_ref: (1, H+2, W+2, Cin) padded NHWC image (bf16), whole image per batch element.
    # w_ref: (9, Cin, Cout) per-tap weights (bf16), tap index = dy*3 + dx.
    # o_ref: (1, TH, W, Cout): row tile pl.program_id(1) of the output.
    TH, W, Cout = o_ref.shape[1], o_ref.shape[2], o_ref.shape[3]
    Cin = x_ref.shape[3]
    row0 = pl.multiple_of(pl.program_id(1) * TH, TH)
    acc = jnp.zeros((TH * W, Cout), jnp.float32)
    for k in range(9):
        dy, dx = divmod(k, 3)
        patch = x_ref[0, pl.ds(row0 + dy, TH), dx:dx + W, :]        # (TH, W, Cin)
        acc = acc + jnp.dot(patch.reshape(TH * W, Cin), w_ref[k],
                            preferred_element_type=jnp.float32)
    acc = _apply_act(acc + b_ref[...], activation)
    o_ref[0] = acc.reshape(TH, W, Cout).astype(o_ref.dtype)


def _conv_row_tile(H, W, cout):
    # The live f32 accumulator is (TH*W, Cout); its *lane-padded* vreg footprint is
    # ceil(TH*W/8) * ceil(Cout/128) vregs.  Keep it around ~64 vregs (the register file)
    # so spills stay small, without shrinking tiles so far that per-grid-step overhead
    # (~0.35us) dominates.
    lane_tiles = -(-cout // 128)
    max_m = max(8, 512 // lane_tiles)
    th = max(1, max_m // W)
    th = min(th, H)
    while H % th:
        th -= 1
    return th


def conv3x3_nhwc(x, w, b=None, activation="none", out_dtype=jnp.bfloat16):
    """3x3 conv, stride 1, pad 1, NHWC input.  w: (Cout, Cin, 3, 3) (torch layout)."""
    N, H, W, Cin = x.shape
    Cout = w.shape[0]
    xp = jnp.pad(x.astype(jnp.bfloat16), ((0, 0), (1, 1), (1, 1), (0, 0)))
    wt = jnp.transpose(w, (2, 3, 1, 0)).reshape(9, Cin, Cout).astype(jnp.bfloat16)
    if b is None:
        b = jnp.zeros((Cout,), jnp.float32)
    b2 = b.astype(jnp.float32).reshape(1, Cout)
    TH = _conv_row_tile(H, W, Cout)
    grid = (N, H // TH)
    return pl.pallas_call(
        functools.partial(_conv3x3_kernel, activation=activation),
        out_shape=jax.ShapeDtypeStruct((N, H, W, Cout), out_dtype),
        grid=grid,
        in_specs=[pl.BlockSpec((1, H + 2, W + 2, Cin), lambda n, t: (n, 0, 0, 0)),
                  pl.BlockSpec((9, Cin, Cout), lambda n, t: (0, 0, 0)),
                  pl.BlockSpec((1, Cout), lambda n, t: (0, 0))],
        out_specs=pl.BlockSpec((1, TH, W, Cout), lambda n, t: (n, t, 0, 0)),
        compiler_params=pltpu.CompilerParams(
            dimension_semantics=("parallel", "parallel"),
            vmem_limit_bytes=_vmem_limit_bytes()),
    )(xp, wt, b2)


def conv1x1_nhwc(x, w, b=None, activation="none", out_dtype=jnp.bfloat16):
    """1x1 conv, NHWC.  w: (Cout, Cin, 1, 1)."""
    N, H, W, Cin = x.shape
    Cout = w.shape[0]
    y = pallas_matmul(x.reshape(N * H * W, Cin), w.reshape(Cout, Cin).T, b,
                      activation=activation, out_dtype=out_dtype)
    return y.reshape(N, H, W, Cout)


# -----------------------------------------------------------------------------
# BatchNorm kernel (train-mode batch stats + per-sample affine + relu)
# -----------------------------------------------------------------------------

def _bn_kernel(x_ref, g_ref, b_ref, o_ref, *, eps, relu, inv_count):
    x = x_ref[...].astype(jnp.float32)                       # (N, HW, TC)
    s = jnp.sum(x, axis=1, keepdims=True)                    # (N, 1, TC)
    mean = jnp.sum(s, axis=0, keepdims=True) * inv_count     # (1, 1, TC)
    d = x - mean
    s2 = jnp.sum(d * d, axis=1, keepdims=True)
    var = jnp.sum(s2, axis=0, keepdims=True) * inv_count     # biased variance (train-mode BN)
    y = g_ref[...] * (d * jax.lax.rsqrt(var + eps)) + b_ref[...]
    if relu:
        y = jnp.maximum(y, 0.0)
    o_ref[...] = y.astype(o_ref.dtype)


def pallas_batchnorm(x, gamma_nc, beta_nc, eps=1e-4, relu=True, out_dtype=jnp.bfloat16):
    """x: (N, H, W, C) NHWC (bf16); gamma_nc/beta_nc: (N, C) per-sample affine."""
    N, H, W, C = x.shape
    HW = H * W
    x3 = x.reshape(N, HW, C)
    g3 = gamma_nc.astype(jnp.float32).reshape(N, 1, C)
    b3 = beta_nc.astype(jnp.float32).reshape(N, 1, C)
    TC = min(C, 128)
    grid = (C // TC,)
    out = pl.pallas_call(
        functools.partial(_bn_kernel, eps=eps, relu=relu, inv_count=1.0 / (N * HW)),
        out_shape=jax.ShapeDtypeStruct((N, HW, C), out_dtype),
        grid=grid,
        in_specs=[pl.BlockSpec((N, HW, TC), lambda c: (0, 0, c)),
                  pl.BlockSpec((N, 1, TC), lambda c: (0, 0, c)),
                  pl.BlockSpec((N, 1, TC), lambda c: (0, 0, c))],
        out_specs=pl.BlockSpec((N, HW, TC), lambda c: (0, 0, c)),
        compiler_params=pltpu.CompilerParams(
            dimension_semantics=("parallel",),
            vmem_limit_bytes=_vmem_limit_bytes()),
    )(x3, g3, b3)
    return out.reshape(N, H, W, C)


# -----------------------------------------------------------------------------
# Fused self-attention kernel (theta conv + softmax + attn@g + o_conv + residual)
# -----------------------------------------------------------------------------

def _attn_kernel(xq_ref, phi_ref, g_ref, wth_ref, wo_ref, o_ref):
    xq = xq_ref[0]                                                          # (TQ, C) bf16
    theta = jnp.dot(xq, wth_ref[...], preferred_element_type=jnp.float32)   # (TQ, C//8)
    # scores: contract channel axis of theta with channel axis of phi -> (TQ, NK)
    s = jax.lax.dot_general(theta.astype(jnp.bfloat16), phi_ref[0],
                            (((1,), (1,)), ((), ())),
                            preferred_element_type=jnp.float32)
    s = s - jnp.max(s, axis=-1, keepdims=True)
    e = jnp.exp(s)
    p = e * pl.reciprocal(jnp.sum(e, axis=-1, keepdims=True), approx=True)
    attn = jnp.dot(p.astype(jnp.bfloat16), g_ref[0],
                   preferred_element_type=jnp.float32)                      # (TQ, C//2)
    o = jnp.dot(attn.astype(jnp.bfloat16), wo_ref[...],
                preferred_element_type=jnp.float32)                         # (TQ, C), gamma folded
    o_ref[0] = (o + xq.astype(jnp.float32)).astype(o_ref.dtype)


def self_attention_nhwc(p, x, tq=128):
    N, H, W, C = x.shape
    C8, C2 = C // 8, C // 2
    wth = sn_weight(p["theta"]).reshape(C8, C).T.astype(jnp.bfloat16)      # (C, C8)
    wph = sn_weight(p["phi"]).reshape(C8, C).T                             # (C, C8)
    wg = sn_weight(p["g"]).reshape(C2, C).T                                # (C, C2)
    # gamma folded into the output projection: gamma * (attn @ wo) == attn @ (gamma * wo)
    wo = (p["gamma"].reshape(()) *
          sn_weight(p["o_conv"]).reshape(C, C2).T).astype(jnp.bfloat16)    # (C2, C)

    # phi & g 1x1 convs at full resolution in ONE matmul (pool AFTER the convs, like torch).
    pg = pallas_matmul(x.reshape(N * H * W, C), jnp.concatenate([wph, wg], axis=1))
    pg = maxpool2_nhwc(pg.reshape(N, H, W, C8 + C2))                       # (N, H/2, W/2, C8+C2)
    NK = (H // 2) * (W // 2)
    pg = pg.reshape(N, NK, C8 + C2)
    phi = pg[:, :, :C8]                                                    # (N, NK, C8) bf16
    g = pg[:, :, C8:]                                                      # (N, NK, C2) bf16

    NQ = H * W
    TQ = min(tq, NQ)
    assert NQ % TQ == 0
    xq = x.reshape(N, NQ, C)                                               # bf16, no cast pass
    out = pl.pallas_call(
        _attn_kernel,
        out_shape=jax.ShapeDtypeStruct((N, NQ, C), jnp.bfloat16),
        grid=(N, NQ // TQ),
        in_specs=[pl.BlockSpec((1, TQ, C), lambda n, q: (n, q, 0)),
                  pl.BlockSpec((1, NK, C8), lambda n, q: (n, 0, 0)),
                  pl.BlockSpec((1, NK, C2), lambda n, q: (n, 0, 0)),
                  pl.BlockSpec((C, C8), lambda n, q: (0, 0)),
                  pl.BlockSpec((C2, C), lambda n, q: (0, 0))],
        out_specs=pl.BlockSpec((1, TQ, C), lambda n, q: (n, q, 0)),
        compiler_params=pltpu.CompilerParams(
            dimension_semantics=("parallel", "parallel"),
            vmem_limit_bytes=_vmem_limit_bytes()),
    )(xq, phi, g, wth, wo)
    return out.reshape(N, H, W, C)


# -----------------------------------------------------------------------------
# JAX glue: spectral norm, upsample, maxpool
# -----------------------------------------------------------------------------

def l2normalize(v, eps=1e-4):
    return v / (jnp.linalg.norm(v) + eps)


def sn_weight(p):
    """One power iteration (SpectralNorm.forward with power_iterations=1)."""
    w_bar = p["w"]
    u = p["u"]
    h = w_bar.shape[0]
    wm = w_bar.reshape(h, -1)
    v = l2normalize(wm.T @ u)
    u2 = l2normalize(wm @ v)
    sigma = jnp.dot(u2, wm @ v)
    return w_bar / sigma


def upsample2x_nhwc(x):
    # F.interpolate(scale_factor=2), default mode='nearest'
    return jnp.repeat(jnp.repeat(x, 2, axis=1), 2, axis=2)


def maxpool2_nhwc(x):
    N, H, W, C = x.shape
    return x.reshape(N, H // 2, 2, W // 2, 2, C).max(axis=(2, 4))


# -----------------------------------------------------------------------------
# Model blocks
# -----------------------------------------------------------------------------

def conditional_gammas(p, cond, cin, cout):
    """All four hyperBN SN-linears of a GBlock batched into one matmul."""
    wcat = jnp.concatenate([sn_weight(p["hbn_gamma"]).T, sn_weight(p["hbn_beta"]).T,
                            sn_weight(p["hbn1_gamma"]).T, sn_weight(p["hbn1_beta"]).T],
                           axis=1)                                       # (148, 2cin+2cout)
    bias = jnp.concatenate([jnp.ones((cin,), jnp.float32), jnp.zeros((cin,), jnp.float32),
                            jnp.ones((cout,), jnp.float32), jnp.zeros((cout,), jnp.float32)])
    gb = pallas_matmul(cond, wcat, bias, compute_dtype=jnp.float32,
                       out_dtype=jnp.float32)                            # (B, 2cin+2cout)
    return (gb[:, :cin], gb[:, cin:2 * cin],
            gb[:, 2 * cin:2 * cin + cout], gb[:, 2 * cin + cout:])


def gblock_forward(p, x, cond):
    """x: (N, Hin, Win, Cin) bf16 NHWC."""
    cin = x.shape[-1]
    cout = p["conv1"]["w"].shape[0]
    g0, b0, g1, b1 = conditional_gammas(p, cond, cin, cout)
    h = pallas_batchnorm(x, g0, b0, eps=1e-4, relu=True)                 # HyperBN + relu (bf16)
    h = upsample2x_nhwc(h)                                               # TODO(synk): fuse into conv0
    h = conv3x3_nhwc(h, sn_weight(p["conv0"]), p["conv0"]["b"])
    h = pallas_batchnorm(h, g1, b1, eps=1e-4, relu=True)                 # HyperBN_1 + relu
    h = conv3x3_nhwc(h, sn_weight(p["conv1"]), p["conv1"]["b"])
    # Skip path: conv_sc (1x1) commutes with nearest upsample -> run it at half resolution
    # (4x fewer MACs, no full-res skip intermediate), then replicate+add as a tiny epilogue.
    skip = conv1x1_nhwc(x, sn_weight(p["conv_sc"]), p["conv_sc"]["b"])   # (N, Hin, Win, cout) bf16
    return h + upsample2x_nhwc(skip)


def generator128_forward(params, z, class_id, chn=8):
    num_split = 6
    codes = jnp.split(z, num_split, axis=1)                              # 6 chunks of 20
    class_emb = pallas_matmul(class_id, params["linear_w"].T,
                              compute_dtype=jnp.float32, out_dtype=jnp.float32)   # (B, 128)

    w_gl = sn_weight(params["G_linear"])
    out = pallas_matmul(codes[0], w_gl.T, params["G_linear"]["b"],
                        compute_dtype=jnp.float32, out_dtype=jnp.bfloat16)
    B = z.shape[0]
    out = out.reshape(B, 4, 4, 16 * chn)                                 # NHWC (torch view order)

    for i, (code, gb) in enumerate(zip(codes[1:], params["gblocks"])):
        if i == 4:  # sa_id
            out = self_attention_nhwc(params["attention"], out)
        condition = jnp.concatenate([code, class_emb], axis=1)           # (B, 148)
        out = gblock_forward(gb, out, condition)

    # ScaledCrossReplicaBN (affine, eps=1e-4) + relu
    N, C = out.shape[0], out.shape[-1]
    g_nc = jnp.broadcast_to(params["bn_w"][None, :], (N, C))
    b_nc = jnp.broadcast_to(params["bn_b"][None, :], (N, C))
    out = pallas_batchnorm(out, g_nc, b_nc, eps=1e-4, relu=True)

    # colorize conv + tanh; pad Cout 3 -> 8 only (not 128), slice after.
    wc = sn_weight(params["colorize"])                                   # (3, chn, 3, 3)
    bc = params["colorize"]["b"]
    pad_c = 8 - wc.shape[0]
    wc_p = jnp.pad(wc, ((0, pad_c), (0, 0), (0, 0), (0, 0)))
    bc_p = jnp.pad(bc, (0, pad_c))
    out = conv3x3_nhwc(out, wc_p, bc_p, activation="tanh",
                       out_dtype=jnp.float32)[..., :3]                   # (N, H, W, 3) f32
    return jnp.transpose(out, (0, 3, 1, 2))                              # NCHW like the module


# -----------------------------------------------------------------------------
# Deterministic parameter initialization (shapes from Generator128.__init__, debug chn=8)
# -----------------------------------------------------------------------------

class ParamGen:
    def __init__(self, key):
        self.key = key

    def normal(self, shape, std=1.0):
        self.key, sub = jax.random.split(self.key)
        return jax.random.normal(sub, shape, jnp.float32) * std


def init_params(key, chn=8, n_class=16):
    gen = ParamGen(key)
    std = 0.05

    def sn_linear(out_f, in_f, bias=True):
        d = {"w": gen.normal((out_f, in_f), std),
             "u": l2normalize(gen.normal((out_f,), 1.0))}
        if bias:
            d["b"] = gen.normal((out_f,), std)
        return d

    def sn_conv(out_c, in_c, k, bias=True):
        d = {"w": gen.normal((out_c, in_c, k, k), std),
             "u": l2normalize(gen.normal((out_c,), 1.0))}
        if bias:
            d["b"] = gen.normal((out_c,), std)
        return d

    z_dim = 148  # code_dim(120) + 28
    params = {
        "linear_w": gen.normal((128, n_class), std),       # nn.Linear(n_class, 128, bias=False)
        "G_linear": sn_linear(4 * 4 * 16 * chn, 20, bias=True),
    }
    chans = [16 * chn, 16 * chn, 8 * chn, 4 * chn, 2 * chn, chn]
    gblocks = []
    for i in range(5):
        cin, cout = chans[i], chans[i + 1]
        gblocks.append({
            "conv0": sn_conv(cout, cin, 3),
            "conv1": sn_conv(cout, cout, 3),
            "conv_sc": sn_conv(cout, cin, 1),
            "hbn_gamma": sn_linear(cin, z_dim, bias=False),
            "hbn_beta": sn_linear(cin, z_dim, bias=False),
            "hbn1_gamma": sn_linear(cout, z_dim, bias=False),
            "hbn1_beta": sn_linear(cout, z_dim, bias=False),
        })
    params["gblocks"] = gblocks

    ca = 2 * chn
    params["attention"] = {
        "theta": sn_conv(ca // 8, ca, 1, bias=False),
        "phi": sn_conv(ca // 8, ca, 1, bias=False),
        "g": sn_conv(ca // 2, ca, 1, bias=False),
        "o_conv": sn_conv(ca, ca // 2, 1, bias=False),
        "gamma": jnp.zeros((1,), jnp.float32),             # torch init: zeros(1)
    }
    params["bn_w"] = jnp.ones((chn,), jnp.float32)          # BatchNorm2d default affine init
    params["bn_b"] = jnp.zeros((chn,), jnp.float32)
    params["colorize"] = sn_conv(3, chn, 3, bias=True)
    return params


# -----------------------------------------------------------------------------
# Main
# -----------------------------------------------------------------------------

if __name__ == "__main__":
    chn = 8          # debug=True -> chn = 8
    n_class = 16     # small class count; class_emb stays 128-dim as in the module
    B = 2

    key = jax.random.PRNGKey(0)
    pkey, zkey, ckey = jax.random.split(key, 3)

    params = init_params(pkey, chn=chn, n_class=n_class)
    z = jax.random.normal(zkey, (B, 120), jnp.float32)                    # 6 chunks of 20
    cls = jax.random.randint(ckey, (B,), 0, n_class)
    class_onehot = jax.nn.one_hot(cls, n_class, dtype=jnp.float32)

    out = generator128_forward(params, z, class_onehot, chn=chn)
    out = jax.block_until_ready(out)

    assert out.shape == (B, 3, 128, 128), out.shape
    assert bool(jnp.all(jnp.isfinite(out)))
    assert bool(jnp.all(jnp.abs(out) <= 1.0 + 1e-5))   # tanh range
    print("KERNEL_OK")
</pallas_src>

<mosaic_0001>
module attributes {stable_mosaic.version = 11 : i64} {
  func.func @_matmul_kernel(%arg0: i32, %arg1: memref<2x16xf32, #tpu.memory_space<vmem>>, %arg2: memref<16x128xf32, #tpu.memory_space<vmem>>, %arg3: memref<1x128xf32, #tpu.memory_space<vmem>>, %arg4: memref<2x128xf32, #tpu.memory_space<vmem>>) attributes {dimension_semantics = [#tpu.dimension_semantics<parallel>], iteration_bounds = array<i64: 1>, scalar_prefetch = 0 : i64, scratch_operands = 0 : i64, tpu.core_type = #tpu.core_type<tc>, window_params = [{transform_indices = @transform_0, window_bounds = array<i64: 2, 16>}, {pipeline_mode = #tpu.pipeline_mode<synchronous>, transform_indices = @transform_1, window_bounds = array<i64: 16, 128>}, {pipeline_mode = #tpu.pipeline_mode<synchronous>, transform_indices = @transform_2, window_bounds = array<i64: 1, 128>}, {transform_indices = @transform_3, window_bounds = array<i64: 2, 128>}]} {
    %c0 = arith.constant 0 : index
    %c0_0 = arith.constant 0 : index
    %0 = vector.load %arg1[%c0, %c0_0] : memref<2x16xf32, #tpu.memory_space<vmem>>, vector<2x16xf32>
    %c0_1 = arith.constant 0 : index
    %c0_2 = arith.constant 0 : index
    %1 = vector.load %arg2[%c0_1, %c0_2] : memref<16x128xf32, #tpu.memory_space<vmem>>, vector<16x128xf32>
    %cst = arith.constant dense<0.000000e+00> : vector<2x128xf32>
    %2 = tpu.matmul %0, %1, %cst {dimension_numbers = #tpu.dot_dimension_numbers<[1], [0], [0], [1], [0, 0, 1, 1], [], []>} : vector<2x16xf32>, vector<16x128xf32>, vector<2x128xf32> -> vector<2x128xf32>
    %c0_3 = arith.constant 0 : index
    %c0_4 = arith.constant 0 : index
    %3 = vector.load %arg3[%c0_3, %c0_4] : memref<1x128xf32, #tpu.memory_space<vmem>>, vector<1x128xf32>
    %4 = vector.broadcast %3 : vector<1x128xf32> to vector<2x128xf32>
    %5 = arith.addf %2, %4 : vector<2x128xf32>
    %c0_5 = arith.constant 0 : index
    %c0_6 = arith.constant 0 : index
    %6 = vector.load %arg4[%c0_5, %c0_6] : memref<2x128xf32, #tpu.memory_space<vmem>>, vector<2x128xf32>
    tpu.vector_store %arg4[%c0_5, %c0_6], %5 {strides = array<i32>} : memref<2x128xf32, #tpu.memory_space<vmem>>, vector<2x128xf32>,
    return
  }
  func.func @transform_0(%arg0: i32) -> (i32, i32) {
    %c0_i32 = arith.constant 0 : i32
    %c0_i32_0 = arith.constant 0 : i32
    return %arg0, %c0_i32 : i32, i32
  }
  func.func @transform_1(%arg0: i32) -> (i32, i32) {
    %c0_i32 = arith.constant 0 : i32
    %c0_i32_0 = arith.constant 0 : i32
    %c0_i32_1 = arith.constant 0 : i32
    return %c0_i32, %c0_i32_0 : i32, i32
  }
  func.func @transform_2(%arg0: i32) -> (i32, i32) {
    %c0_i32 = arith.constant 0 : i32
    %c0_i32_0 = arith.constant 0 : i32
    %c0_i32_1 = arith.constant 0 : i32
    return %c0_i32, %c0_i32_0 : i32, i32
  }
  func.func @transform_3(%arg0: i32) -> (i32, i32) {
    %c0_i32 = arith.constant 0 : i32
    %c0_i32_0 = arith.constant 0 : i32
    return %arg0, %c0_i32 : i32, i32
  }
}

</mosaic_0001>

<bundles_post_ra>
// kernel: tpu_custom_call.1
= control target key start
LH: loop header
LB: loop body
LE: loop exit
PB: predicated region body
PF: predicated region fallthrough
CT: control target
= control target key end

     0   :  { %8 = vsyncpa [#allocation3], 0  ;;  %s348_s0 = inlined_call_operand.hbm [shape: f32[2,16], index: 0, kind: input, shape index: {}]   ;;  %s349_s1 = inlined_call_operand.hbm [shape: f32[16,128], index: 1, kind: input, shape index: {}]   ;;  %s350_s2 = inlined_call_operand.hbm [shape: f32[1,128], index: 2, kind: input, shape index: {}]   ;;  %s351_s3 = inlined_call_operand.hbm [shape: f32[2,128], index: 3, kind: output, shape index: {}]  }
   0x1   :  { %9 = vsyncpa [#allocation6], 0 }
   0x2   :  { %10 = vsyncpa [#allocation4], 0  ;;  %s271_s12 = smov [#allocation5]   ;;  %s177_s16 = scalar_lea.hbm %s349_s1, 256 }
   0x3   :  { %s26_s13 = sshll.u32 %s271_s12, 4  ;;  %p178_p0 = scmp.ne.s32.totalorder %s349_s1, %s177_s16  ;;  %s27_s13 = int_to_ptr.vmem [resolvable:$true] %s26_s13 }
   0x4   :  { %p181_p1 = scmp.lt.u32.totalorder %s177_s16, %s349_s1 }
   0x6   :  { %p183_p2 = pnand %p181_p1, %p178_p0 }
   0x8   :  { %186 = shalt.err (!%p183_p2)
}
   0x9   :  { %s187_s21 = scalar_lea.vmem %s27_s13, 256  ;;  %p192_p4 = scmp.lt.s32.totalorder %s27_s13, %s27_s13 }
   0xa   :  { %p188_p3 = scmp.ne.s32.totalorder %s27_s13, %s187_s21  ;;  %p193_p5 = scmp.lt.s32.totalorder %s187_s21, %s187_s21 }
   0xc   :  { %p194_p6 = por %p193_p5, %p192_p4 }
   0xe   :  { %p195_p7 = pnand %p194_p6, %p188_p3 }
  0x10   :  { %198 = shalt.err (!%p195_p7)
}
  0x11   :  { %s272_s22 = smov 128   ;;  %s273_s23 = smov 8  }
  0x12   :  { %32 = dma.hbm_to_vmem [thread:$0]  %s349_s1, 256, %s27_s13, [#allocation6], %s272_s22, %s272_s22, %s273_s23  }
  0x13   :  { %s274_s26 = smov [#allocation2]   ;;  %s275_s28 = smov [#allocation7]  }
  0x14   :  { %s17_s27 = sshll.u32 %s274_s26, 4  ;;  %s39_s29 = sshll.u32 %s275_s28, 4  ;;  %s18_s27 = int_to_ptr.vmem [resolvable:$true] %s17_s27  ;;  %s40_s29 = int_to_ptr.vmem [resolvable:$true] %s39_s29 }
  0x15   :  { %s199_s5 = scalar_lea.hbm %s348_s0, 32 }
  0x16   :  { %p200_p8 = scmp.ne.s32.totalorder %s348_s0, %s199_s5  ;;  %p203_p9 = scmp.lt.u32.totalorder %s199_s5, %s348_s0 }
  0x18   :  { %p205_p10 = pnand %p203_p9, %p200_p8 }
  0x1a   :  { %208 = shalt.err (!%p205_p10)
}
  0x1b   :  { %s209_s1 = scalar_lea.vmem %s18_s27, 32  ;;  %p214_p12 = scmp.lt.s32.totalorder %s18_s27, %s18_s27 }
  0x1c   :  { %p210_p11 = scmp.ne.s32.totalorder %s18_s27, %s209_s1  ;;  %p215_p13 = scmp.lt.s32.totalorder %s209_s1, %s209_s1 }
  0x1e   :  { %p216_p0 = por %p215_p13, %p214_p12 }
  0x20   :  { %p217_p1 = pnand %p216_p0, %p210_p11 }
  0x22   :  { %220 = shalt.err (!%p217_p1)
}
  0x23   :  { %20 = dma.hbm_to_vmem [thread:$0]  %s348_s0, 32, %s18_s27, [#allocation3]  }
  0x24   :  { %s221_s14 = scalar_lea.hbm %s350_s2, 16 }
  0x25   :  { %p222_p2 = scmp.ne.s32.totalorder %s350_s2, %s221_s14  ;;  %p225_p3 = scmp.lt.u32.totalorder %s221_s14, %s350_s2 }
  0x27   :  { %p227_p4 = pnand %p225_p3, %p222_p2 }
  0x29   :  { %230 = shalt.err (!%p227_p4)
}
  0x2a   :  { %s231_s19 = scalar_lea.vmem %s40_s29, 16  ;;  %s235_s20 = scalar_lea.vmem %s40_s29, 32 }
  0x2b   :  { %p232_p5 = scmp.ne.s32.totalorder %s40_s29, %s231_s19  ;;  %p236_p6 = scmp.lt.s32.totalorder %s40_s29, %s40_s29 }
  0x2c   :  { %p237_p7 = scmp.lt.s32.totalorder %s235_s20, %s231_s19 }
  0x2e   :  { %p238_p8 = por %p237_p7, %p236_p6 }
  0x30   :  { %p239_p9 = pnand %p238_p8, %p232_p5 }
  0x32   :  { %242 = shalt.err (!%p239_p9)
}
  0x33   :  { %42 = dma.hbm_to_vmem [thread:$0]  %s350_s2, 16, %s40_s29, [#allocation6]  }
  0x34   :  { %265 = dma.done.wait [#allocation3], 32  }
  0x35   :  { %266 = vsyncadd [#allocation3], 4294967264 }
  0x36   :  { %267 = dma.done.wait [#allocation6], 272  }
  0x37   :  { %268 = vsyncadd [#allocation6], 4294967024  ;;  %v276_v0 = vmov 0.0|0.0   ;;  %vm277_vm0 = vmmov 0   ;;  %v278_v1 = vmov 0.0   ;;  %v53_v2 = vld [vmem:[#allocation5] sm:$0xff] }
  0x38   :  { %165 = vmatprep.subr.bf16.mxu0 %v276_v0  ;;  %162 = vmatprep.mubr.msk.f32.mxu0 %vm277_vm0, %v278_v1  ;;  %v54_v3 = vld [vmem:[#allocation5 + $0x8] sm:$0xff]  ;;  %v52_v5 = vld [vmem:[#allocation2] sm:$0x3]  ;;  %vm62_vm1 = vcmask 130048   ;;  %v153_v6 = vld [vmem:[#allocation7] ss:$0 sm:$0xff] }
  0x39   :  { %v166_v4 = vpack.c.bf16 %v54_v3, %v53_v2  ;;  %s279_s22 = smov [#allocation8]  }
  0x3a   :  { %s143_s23 = sshll.u32 %s279_s22, 4  ;;  %s144_s23 = int_to_ptr.vmem [resolvable:$true] %s143_s23 }
  0x3b   :  { %167 = vmatpush3.bf16.msra.mxu0 %v166_v4  ;;  %s243_s2 = scalar_lea.vmem %s144_s23, 32  ;;  %p248_p11 = scmp.lt.s32.totalorder %s144_s23, %s144_s23 }
  0x3c   :  { %p244_p10 = scmp.ne.s32.totalorder %s144_s23, %s243_s2  ;;  %p249_p12 = scmp.lt.s32.totalorder %s243_s2, %s243_s2 }
  0x3e   :  { %163 = vmatmul.mubr.msk.f32.vlgmr.msra.gmra.mrb[0].mxu0 %vm62_vm1, %v52_v5  ;;  %p250_p13 = por %p249_p12, %p248_p11 }
  0x40   :  { %p251_p0 = pnand %p250_p13, %p244_p10 }
 0x111   :  { %v132_v7 = vpop.f32.mrb[0].mxu0 }
 0x112   :  { %v133_v8 = vadd.f32 %v153_v6, %v132_v7  ;;  %v164_v9 = vpop.f32.mrb[1].mxu0 }
 0x114   :  { %136 = vst [vmem:[#allocation8] sm:$0x3] %v133_v8 }
 0x115   :  { %254 = shalt.err (!%p251_p0)
}
 0x116   :  { %s255_s26 = scalar_lea.hbm %s351_s3, 32 }
 0x117   :  { %p256_p1 = scmp.ne.s32.totalorder %s351_s3, %s255_s26  ;;  %p259_p2 = scmp.lt.u32.totalorder %s255_s26, %s351_s3 }
 0x119   :  { %p261_p3 = pnand %p259_p2, %p256_p1 }
 0x11b   :  { %264 = shalt.err (!%p261_p3)
}
 0x11c   :  { %146 = dma.vmem_to_hbm [thread:$0]  %s144_s23, 32, %s351_s3, [#allocation4]  }
 0x11d   :  { %269 = dma.done.wait [#allocation4], 32  }
 0x11e   :  { %270 = vsyncadd [#allocation4], 4294967264 }
 0x11f   :  { %150 = vsyncpa [#allocation3], 1 }
 0x120   :  { %151 = vsyncpa [#allocation6], 1 }
 0x121   :  { %152 = vsyncpa [#allocation4], 1 }

</bundles_post_ra>
